<compile_context>
chip_gen: v7x
topology: tpu7x:2x2x1
jax: 0.10.0
libtpu: 0.0.40
codegen_flags: <defaults>
</compile_context>

<pallas_src>
import functools
import math

import jax
import jax.numpy as jnp
from jax.experimental import pallas as pl
from jax.experimental.pallas import tpu as pltpu

LANES = 128
TM_MAX = 4096      # rows per grid step: (4096,128) f32 block = 2 MiB per input
NUM_CORES = 2      # core-parallel split; also correct (tiny overhead) on 1-TC chips
OUT_ROWS = 8       # per-core output block is (8,128) to keep (8,128)-aligned tiling


def _bce_mask_kernel(logits_ref, gt_ref, loss_out_ref, mask_out_ref, *,
                     ignore_index, numel, tm, num_i):
    """Grid = (core, row_tile).  Blocks:
    logits_ref/gt_ref : VMEM (tm, 128)  native dtype
    loss_out_ref      : VMEM (8, 128)   f32, per-core partial (row 0 holds data)
    mask_out_ref      : VMEM (8, 128)   f32, per-core partial (row 0 holds data)
    """
    c = pl.program_id(0)   # core-parallel axis
    i = pl.program_id(1)   # reduction axis over row tiles

    @pl.when(i == 0)
    def _init():
        loss_out_ref[...] = jnp.zeros_like(loss_out_ref)
        mask_out_ref[...] = jnp.zeros_like(mask_out_ref)

    # Native-dtype loads; upcast on-core (hidden under the DMA).
    x = logits_ref[...].astype(jnp.float32)
    g = gt_ref[...].astype(jnp.float32)

    # Logical (unclamped) element index of every slot in this tile.  The input
    # index_map clamps the block index, so duplicated / out-of-range tiles are
    # fully masked out here.
    tile_idx = c * num_i + i
    row_start = tile_idx * tm
    row_ids = jax.lax.broadcasted_iota(jnp.int32, (tm, LANES), 0) + row_start
    lane_ids = jax.lax.broadcasted_iota(jnp.int32, (tm, LANES), 1)
    in_bounds = (row_ids * LANES + lane_ids) < numel

    valid = jnp.logical_and(in_bounds, g != jnp.float32(ignore_index))

    # Stable BCE-with-logits: max(x,0) - x*gt + log1p(exp(-|x|)).
    loss = jnp.maximum(x, 0.0) - x * g + jnp.log1p(jnp.exp(-jnp.abs(x)))

    # Select (not multiply) so garbage in masked slots never propagates.
    loss_step = jnp.sum(jnp.where(valid, loss, 0.0), axis=0, keepdims=True)
    mask_step = jnp.sum(valid.astype(jnp.float32), axis=0, keepdims=True)

    loss_out_ref[0:1, :] = loss_out_ref[0:1, :] + loss_step
    mask_out_ref[0:1, :] = mask_out_ref[0:1, :] + mask_step


def bce_with_mask(logits, gt, ignore_index):
    """logits, gt: same-shaped arrays (e.g. NCHW, any float dtype). Scalar f32 loss."""
    assert logits.shape == gt.shape
    ignore_index = float(ignore_index)
    numel = math.prod(logits.shape)

    x = logits.reshape(-1)   # row-major flatten: free for default layouts
    g = gt.reshape(-1)

    # Only lane-alignment padding (< 128 elements).  Tile-boundary padding is
    # handled in-kernel by the element-index mask, so no big concatenate.
    rem = numel % LANES
    if rem:
        # TODO(synk): this tiny pad still copies both inputs once; a 1-D
        # BlockSpec path would avoid it for non-lane-aligned sizes.
        pad = LANES - rem
        x = jnp.pad(x, (0, pad))
        g = jnp.pad(g, (0, pad))
    rows = x.shape[0] // LANES
    x2 = x.reshape(rows, LANES)
    g2 = g.reshape(rows, LANES)

    # Row tile: whole array if it fits (block == full dim is always legal),
    # else a large multiple-of-32 tile so any input dtype packs cleanly.
    tm = rows if rows <= TM_MAX else TM_MAX
    row_tiles = pl.cdiv(rows, tm)
    num_i = pl.cdiv(row_tiles, NUM_CORES)

    def in_map(c, i):
        # Clamp so the DMA never targets an out-of-range block; the kernel
        # masks the duplicated tile via the logical element index.
        return (jnp.minimum(c * num_i + i, row_tiles - 1), 0)

    kernel = functools.partial(_bce_mask_kernel, ignore_index=ignore_index,
                               numel=numel, tm=tm, num_i=num_i)

    loss_part, mask_part = pl.pallas_call(
        kernel,
        out_shape=(
            jax.ShapeDtypeStruct((NUM_CORES * OUT_ROWS, LANES), jnp.float32),
            jax.ShapeDtypeStruct((NUM_CORES * OUT_ROWS, LANES), jnp.float32),
        ),
        grid_spec=pltpu.PrefetchScalarGridSpec(
            num_scalar_prefetch=0,
            grid=(NUM_CORES, num_i),
            in_specs=[
                pl.BlockSpec((tm, LANES), in_map),
                pl.BlockSpec((tm, LANES), in_map),
            ],
            out_specs=[
                pl.BlockSpec((OUT_ROWS, LANES), lambda c, i: (c, 0)),
                pl.BlockSpec((OUT_ROWS, LANES), lambda c, i: (c, 0)),
            ],
        ),
        compiler_params=pltpu.CompilerParams(
            dimension_semantics=("parallel", "arbitrary"),
            vmem_limit_bytes=32 * 1024 * 1024,
        ),
    )(x2, g2)

    # Final cross-lane reduce + divide in the wrapper (tiny XLA ops).
    # Matches PyTorch: divides by zero (inf/NaN) if every element is ignored.
    return jnp.sum(loss_part) / jnp.sum(mask_part)


def _reference(logits, gt, ignore_index):
    mask = (gt != ignore_index).astype(jnp.float32)
    prob = jax.nn.sigmoid(logits)
    loss = -jnp.log(prob) * gt - jnp.log(1.0 - prob) * (1.0 - gt)
    return jnp.sum(loss * mask) / jnp.sum(mask)


if __name__ == "__main__":
    ignore_index = -1.0  # typical "ignore" label value for BCE targets

    key = jax.random.PRNGKey(0)
    k1, k2, k3 = jax.random.split(key, 3)

    B, C, H, W = 2, 4, 16, 16  # numel = 2048
    logits = jax.random.normal(k1, (B, C, H, W), dtype=jnp.float32)
    # Binary ground-truth in {0, 1}, with ~20% of pixels set to ignore_index.
    gt = jax.random.bernoulli(k2, 0.5, (B, C, H, W)).astype(jnp.float32)
    ignore_mask = jax.random.bernoulli(k3, 0.2, (B, C, H, W))
    gt = jnp.where(ignore_mask, jnp.float32(ignore_index), gt)

    loss = bce_with_mask(logits, gt, ignore_index)
    jax.block_until_ready(loss)

    ref = _reference(logits, gt, ignore_index)
    assert jnp.allclose(loss, ref, rtol=1e-5, atol=1e-5), (loss, ref)

    print("KERNEL_OK")
</pallas_src>

<mosaic_0001>
module attributes {stable_mosaic.version = 11 : i64} {
  func.func @_bce_mask_kernel(%arg0: i32, %arg1: i32, %arg2: memref<16x128xf32, #tpu.memory_space<vmem>>, %arg3: memref<16x128xf32, #tpu.memory_space<vmem>>, %arg4: memref<8x128xf32, #tpu.memory_space<vmem>>, %arg5: memref<8x128xf32, #tpu.memory_space<vmem>>) attributes {dimension_semantics = [#tpu.dimension_semantics<parallel>, #tpu.dimension_semantics<arbitrary>], iteration_bounds = array<i64: 2, 1>, scalar_prefetch = 0 : i64, scratch_operands = 0 : i64, tpu.core_type = #tpu.core_type<tc>, window_params = [{transform_indices = @transform_0, window_bounds = array<i64: 16, 128>}, {transform_indices = @transform_1, window_bounds = array<i64: 16, 128>}, {transform_indices = @transform_2, window_bounds = array<i64: 8, 128>}, {transform_indices = @transform_3, window_bounds = array<i64: 8, 128>}]} {
    %c0_i32 = arith.constant 0 : i32
    %0 = arith.cmpi eq, %arg1, %c0_i32 : i32
    %1 = arith.extui %0 : i1 to i32
    %c0_i32_0 = arith.constant 0 : i32
    %2 = arith.cmpi ne, %1, %c0_i32_0 : i32
    scf.if %2 {
      %cst_17 = arith.constant 0.000000e+00 : f32
      %44 = vector.broadcast %cst_17 : f32 to vector<8x128xf32>
      %c0_18 = arith.constant 0 : index
      %c0_19 = arith.constant 0 : index
      %45 = vector.load %arg4[%c0_18, %c0_19] : memref<8x128xf32, #tpu.memory_space<vmem>>, vector<8x128xf32>
      tpu.vector_store %arg4[%c0_18, %c0_19], %44 {strides = array<i32>} : memref<8x128xf32, #tpu.memory_space<vmem>>, vector<8x128xf32>,
      %cst_20 = arith.constant 0.000000e+00 : f32
      %46 = vector.broadcast %cst_20 : f32 to vector<8x128xf32>
      %c0_21 = arith.constant 0 : index
      %c0_22 = arith.constant 0 : index
      %47 = vector.load %arg5[%c0_21, %c0_22] : memref<8x128xf32, #tpu.memory_space<vmem>>, vector<8x128xf32>
      tpu.vector_store %arg5[%c0_21, %c0_22], %46 {strides = array<i32>} : memref<8x128xf32, #tpu.memory_space<vmem>>, vector<8x128xf32>,
    } else {
    }
    %c0 = arith.constant 0 : index
    %c0_1 = arith.constant 0 : index
    %3 = vector.load %arg2[%c0, %c0_1] : memref<16x128xf32, #tpu.memory_space<vmem>>, vector<16x128xf32>
    %c0_2 = arith.constant 0 : index
    %c0_3 = arith.constant 0 : index
    %4 = vector.load %arg3[%c0_2, %c0_3] : memref<16x128xf32, #tpu.memory_space<vmem>>, vector<16x128xf32>
    %c1_i32 = arith.constant 1 : i32
    %5 = arith.muli %arg0, %c1_i32 : i32
    %6 = arith.addi %5, %arg1 : i32
    %c16_i32 = arith.constant 16 : i32
    %7 = arith.muli %6, %c16_i32 : i32
    %8 = tpu.iota {dimensions = array<i32: 0>} : vector<16x128xi32>
    %9 = vector.broadcast %7 : i32 to vector<16x128xi32>
    %10 = arith.addi %8, %9 : vector<16x128xi32>
    %11 = tpu.iota {dimensions = array<i32: 1>} : vector<16x128xi32>
    %c128_i32 = arith.constant 128 : i32
    %12 = vector.broadcast %c128_i32 : i32 to vector<16x128xi32>
    %13 = arith.muli %10, %12 : vector<16x128xi32>
    %14 = arith.addi %13, %11 : vector<16x128xi32>
    %c2048_i32 = arith.constant 2048 : i32
    %15 = vector.broadcast %c2048_i32 : i32 to vector<16x128xi32>
    %16 = arith.cmpi slt, %14, %15 : vector<16x128xi32>
    %cst = arith.constant -1.000000e+00 : f32
    %17 = vector.broadcast %cst : f32 to vector<16x128xf32>
    %18 = arith.cmpf one, %4, %17 : vector<16x128xf32>
    %19 = arith.andi %16, %18 : vector<16x128xi1>
    %cst_4 = arith.constant 0.000000e+00 : f32
    %20 = vector.broadcast %cst_4 : f32 to vector<16x128xf32>
    %21 = arith.maximumf %3, %20 : vector<16x128xf32>
    %22 = arith.mulf %3, %4 : vector<16x128xf32>
    %23 = arith.subf %21, %22 : vector<16x128xf32>
    %24 = math.absf %3 : vector<16x128xf32>
    %cst_5 = arith.constant 0.000000e+00 : f32
    %25 = vector.broadcast %cst_5 : f32 to vector<16x128xf32>
    %26 = arith.subf %25, %24 : vector<16x128xf32>
    %27 = math.exp %26 : vector<16x128xf32>
    %28 = math.log1p %27 : vector<16x128xf32>
    %29 = arith.addf %23, %28 : vector<16x128xf32>
    %cst_6 = arith.constant 0.000000e+00 : f32
    %30 = vector.broadcast %cst_6 : f32 to vector<16x128xf32>
    %31 = arith.select %19, %29, %30 : vector<16x128xi1>, vector<16x128xf32>
    %cst_7 = arith.constant dense<0.000000e+00> : vector<128xf32>
    %32 = vector.multi_reduction <add>, %31, %cst_7 [0] : vector<16x128xf32> to vector<128xf32>
    %33 = vector.shape_cast %32 : vector<128xf32> to vector<1x128xf32>
    %34 = arith.extui %19 : vector<16x128xi1> to vector<16x128xi32>
    %35 = arith.sitofp %34 : vector<16x128xi32> to vector<16x128xf32>
    %cst_8 = arith.constant dense<0.000000e+00> : vector<128xf32>
    %36 = vector.multi_reduction <add>, %35, %cst_8 [0] : vector<16x128xf32> to vector<128xf32>
    %37 = vector.shape_cast %36 : vector<128xf32> to vector<1x128xf32>
    %c0_9 = arith.constant 0 : index
    %c0_10 = arith.constant 0 : index
    %38 = vector.load %arg4[%c0_9, %c0_10] : memref<8x128xf32, #tpu.memory_space<vmem>>, vector<1x128xf32>
    %39 = arith.addf %38, %33 : vector<1x128xf32>
    %c0_11 = arith.constant 0 : index
    %c0_12 = arith.constant 0 : index
    %40 = vector.load %arg4[%c0_11, %c0_12] : memref<8x128xf32, #tpu.memory_space<vmem>>, vector<1x128xf32>
    tpu.vector_store %arg4[%c0_11, %c0_12], %39 {strides = array<i32>} : memref<8x128xf32, #tpu.memory_space<vmem>>, vector<1x128xf32>,
    %c0_13 = arith.constant 0 : index
    %c0_14 = arith.constant 0 : index
    %41 = vector.load %arg5[%c0_13, %c0_14] : memref<8x128xf32, #tpu.memory_space<vmem>>, vector<1x128xf32>
    %42 = arith.addf %41, %37 : vector<1x128xf32>
    %c0_15 = arith.constant 0 : index
    %c0_16 = arith.constant 0 : index
    %43 = vector.load %arg5[%c0_15, %c0_16] : memref<8x128xf32, #tpu.memory_space<vmem>>, vector<1x128xf32>
    tpu.vector_store %arg5[%c0_15, %c0_16], %42 {strides = array<i32>} : memref<8x128xf32, #tpu.memory_space<vmem>>, vector<1x128xf32>,
    return
  }
  func.func @transform_0(%arg0: i32, %arg1: i32) -> (i32, i32) {
    %c1_i32 = arith.constant 1 : i32
    %0 = arith.muli %arg0, %c1_i32 : i32
    %1 = arith.addi %0, %arg1 : i32
    %c0_i32 = arith.constant 0 : i32
    %2 = arith.minsi %1, %c0_i32 : i32
    %c0_i32_0 = arith.constant 0 : i32
    %c0_i32_1 = arith.constant 0 : i32
    return %2, %c0_i32_0 : i32, i32
  }
  func.func @transform_1(%arg0: i32, %arg1: i32) -> (i32, i32) {
    %c1_i32 = arith.constant 1 : i32
    %0 = arith.muli %arg0, %c1_i32 : i32
    %1 = arith.addi %0, %arg1 : i32
    %c0_i32 = arith.constant 0 : i32
    %2 = arith.minsi %1, %c0_i32 : i32
    %c0_i32_0 = arith.constant 0 : i32
    %c0_i32_1 = arith.constant 0 : i32
    return %2, %c0_i32_0 : i32, i32
  }
  func.func @transform_2(%arg0: i32, %arg1: i32) -> (i32, i32) {
    %c0_i32 = arith.constant 0 : i32
    %c0_i32_0 = arith.constant 0 : i32
    return %arg0, %c0_i32 : i32, i32
  }
  func.func @transform_3(%arg0: i32, %arg1: i32) -> (i32, i32) {
    %c0_i32 = arith.constant 0 : i32
    %c0_i32_0 = arith.constant 0 : i32
    return %arg0, %c0_i32 : i32, i32
  }
}

</mosaic_0001>

<bundles_post_ra>
// kernel: tpu_custom_call.1
= control target key start
LH: loop header
LB: loop body
LE: loop exit
PB: predicated region body
PF: predicated region fallthrough
CT: control target
= control target key end

     0   :  { %9 = vsyncpa [#allocation3], 0  ;;  %s1181_s0 = inlined_call_operand.hbm [shape: f32[16,128], index: 0, kind: input, shape index: {}]   ;;  %s1182_s1 = inlined_call_operand.hbm [shape: f32[16,128], index: 1, kind: input, shape index: {}]   ;;  %s1183_s2 = inlined_call_operand.hbm [shape: f32[16,128], index: 2, kind: output, shape index: {0}]   ;;  %s1184_s3 = inlined_call_operand.hbm [shape: f32[16,128], index: 3, kind: output, shape index: {1}]  }
   0x1   :  { %11 = vsyncpa [#allocation3 + $0x1], 0 }
   0x2   :  { %12 = vsyncpa [#allocation6], 0 }
   0x3   :  { %14 = vsyncpa [#allocation6 + $0x1], 0 }
   0x4   :  { %15 = vsyncpa [#allocation4], 0 }
   0x5   :  { %17 = vsyncpa [#allocation4 + $0x1], 0 }
   0x6   :  { %18 = vsyncpa [#allocation9], 0 }
   0x7   :  { %20 = vsyncpa [#allocation9 + $0x1], 0  ;;  %s894_s12 = smov 0   ;;  %s896_s13 = smov 0  }
   0x8   :  { %s898_s14 = smov 0   ;;  %s900_s15 = smov 0  }
   0x9   :  { %s902_s16 = smov 0   ;;  %s904_s17 = smov 0  }
   0xa   :  { %s906_s18 = smov 0   ;;  %s908_s19 = smov 0  }
   0xb LB: > { %s533_s20 = sadd.s32 4294967295, %s865_s19   ;;  %s534_s21 = sadd.s32 4294967294, %s865_s19   ;;  %s865_s19 = sphi %s908_s19, %s26_s19   ;;  %s861_s18 = sphi %s906_s18, %s1207_s18   ;;  %s857_s17 = sphi %s904_s17, %s1206_s17   ;;  %s853_s16 = sphi %s902_s16, %s1171_s16   ;;  %s849_s15 = sphi %s900_s15, %s1205_s15   ;;  %s845_s14 = sphi %s898_s14, %s1204_s14   ;;  %s841_s13 = sphi %s896_s13, %s1203_s13   ;;  %s837_s12 = sphi %s894_s12, %s1202_s12  }
   0xc   : > { %s38_s22 = sadd.s32 1, %s861_s18  ;;  %p834_p1 = scmp.ne.s32.totalorder %s853_s16, 0 }
   0xd   : > { %p40_p0 = scmp.ge.s32.totalorder %s38_s22, 2  ;;  %p59_p2 = scmp.eq.s32.totalorder %s865_s19, 0 }
   0xe   : > { %p64_p3 = scmp.ne.s32.totalorder %s853_s16, %s849_s15  ;;  %p65_p5 = scmp.eq.s32.totalorder %s533_s20, 0 }
   0xf   : > { %s1209_s22 = smov (%p40_p0, %s38_s22), 0  ;;  %p940_p4 = por %p834_p1, %p59_p2 }
  0x10   : > { %p944_p6 = por %p65_p5, %p64_p3  ;;  %s106_s25 = ssub.s32 %s861_s18, %s1209_s22 }
  0x11   : > { %p107_p7 = scmp.eq.s32.totalorder %s106_s25, 0  ;;  %s109_s26 = sadd.s32 1, %s845_s14 }
  0x12   : > { %s1188_s24 = scalar_select %p944_p6, 1, 0 }
  0x13   : > { %s952_s27 = scalar_select %p107_p7, %s845_s14, %s109_s26  }
  0x14   : > { %p119_p8 = scmp.ne.s32.totalorder %s845_s14, %s841_s13  ;;  %p120_p9 = scmp.eq.s32.totalorder %s533_s20, 1 }
  0x15   : > { %p125_p10 = scmp.ne.s32.totalorder %s841_s13, %s837_s12  ;;  %p126_p11 = scmp.eq.s32.totalorder %s534_s21, 1 }
  0x16   : > { %p958_p12 = por %p120_p9, %p119_p8  ;;  %p581_p1 = scmp.lt.s32.totalorder %s865_s19, 2 }
  0x17   : > { %p963_p0 = por %p126_p11, %p125_p10  ;;  %s867_s30 = smov [#allocation2]  }
  0x18   : > { %s1189_s28 = scalar_select %p958_p12, 1, 0 }
  0x19   : > { %s1190_s29 = scalar_select %p963_p0, 1, 0 }
  0x1a   : > { %s186_s4 = sshll.u32 %s867_s30, 4  ;;  %p970_p2 = pnand %p581_p1, %p940_p4  ;;  %s187_s4 = int_to_ptr.vmem [resolvable:$true] %s186_s4 }
  0x1b   : > { %s666_s8 = scalar_lea.hbm %s1181_s0, 256 }
  0x1c   : > { %p667_p3 = scmp.ne.s32.totalorder %s1181_s0, %s666_s8  ;;  %p668_p5 = pneg %p970_p2 }
  0x1d   : > { %p673_p8 = scmp.lt.u32.totalorder %s666_s8, %s666_s8  ;;  %p675_p9 = scmp.lt.u32.totalorder %s666_s8, %s1181_s0 }
  0x1e   : > { %p669_p7 = pnand %p668_p5, %p667_p3 }
  0x1f   : > { %p676_p10 = por %p675_p9, %p673_p8 }
  0x20   : > { %p670_p4 = pneg %p669_p7 }
  0x22   : > { %p677_p11 = pnand %p676_p10, %p670_p4 }
  0x24   : > { %680 = shalt.err (!%p677_p11)
}
  0x25   : > { %s681_s20 = scalar_lea.vmem %s187_s4, 256  ;;  %s688_s21 = scalar_lea.vmem %s187_s4, 512 }
  0x26   : > { %p682_p1 = scmp.ne.s32.totalorder %s187_s4, %s681_s20  ;;  %p689_p12 = scmp.lt.s32.totalorder %s187_s4, %s187_s4 }
  0x27   : > { %p690_p6 = scmp.lt.s32.totalorder %s688_s21, %s681_s20 }
  0x28   : > { %p684_p13 = pnand %p682_p1, %p668_p5 }
  0x29   : > { %p691_p3 = por %p690_p6, %p689_p12 }
  0x2a   : > { %p685_p0 = pneg %p684_p13 }
  0x2c   : > { %p692_p7 = pnand %p691_p3, %p685_p0 }
  0x2e   : > { %695 = shalt.err (!%p692_p7)
}
  0x2f   : > { %s868_s23 = smov 128   ;;  %s869_s25 = smov 8  }
  0x30   : > { %570 = dma.hbm_to_vmem [thread:$0]  (!%p970_p2), %s1181_s0, 256, %s187_s4, [#allocation3], %s868_s23, %s868_s23, %s869_s25  }
  0x31   : > { %p543_p13 = scmp.ge.s32.totalorder %s865_s19, 1  ;;  %p218_p4 = scmp.lt.s32.totalorder %s865_s19, 3 }
  0x32   : > { %s870_s7 = smov [#allocation5]   ;;  %s696_s11 = scalar_lea.hbm %s1182_s1, 256 }
  0x33   : > { %p1001_p8 = pnand %p543_p13, %p218_p4  ;;  %s210_s8 = sshll.u32 %s870_s7, 4  ;;  %s211_s8 = int_to_ptr.vmem [resolvable:$true] %s210_s8 }
  0x34   : > { %p697_p6 = scmp.ne.s32.totalorder %s1182_s1, %s696_s11  ;;  %p703_p9 = scmp.lt.u32.totalorder %s696_s11, %s696_s11 }
  0x35   : > { %s1192_s6 = scalar_select %p1001_p8, 1, 0 }
  0x36   : > { %p699_p12 = pnand %p697_p6, %p668_p5  ;;  %p705_p10 = scmp.lt.u32.totalorder %s696_s11, %s1182_s1 }
  0x38   : > { %p700_p0 = pneg %p699_p12  ;;  %p706_p11 = por %p705_p10, %p703_p9 }
  0x3a   : > { %p707_p1 = pnand %p706_p11, %p700_p0 }
  0x3c   : > { %710 = shalt.err (!%p707_p1)
}
  0x3d   : > { %s711_s26 = scalar_lea.vmem %s211_s8, 256  ;;  %s718_s30 = scalar_lea.vmem %s211_s8, 512 }
  0x3e   : > { %p712_p3 = scmp.ne.s32.totalorder %s211_s8, %s711_s26  ;;  %p719_p4 = scmp.lt.s32.totalorder %s211_s8, %s211_s8 }
  0x3f   : > { %p720_p8 = scmp.lt.s32.totalorder %s718_s30, %s711_s26 }
  0x40   : > { %p714_p7 = pnand %p712_p3, %p668_p5 }
  0x41   : > { %p721_p6 = por %p720_p8, %p719_p4 }
  0x42   : > { %p715_p13 = pneg %p714_p7 }
  0x44   : > { %p722_p12 = pnand %p721_p6, %p715_p13 }
  0x46   : > { %725 = shalt.err (!%p722_p12)
}
  0x47   : > { %573 = dma.hbm_to_vmem [thread:$0]  (!%p970_p2), %s1182_s1, 256, %s211_s8, [#allocation6], %s868_s23, %s868_s23, %s869_s25  }
  0x48   : > { %p1193_p0 = scmp.ne.s32.totalorder %s1192_s6, 0 }
  0x49   : > { %s224_s10 = sand.u32 (!%p1193_p0), 1, %s853_s16   ;;  %p1194_p5 = scmp.ne.s32.totalorder (!%p1193_p0), %s1188_s24, 0 }
  0x4a   : > { %222 = sbr.rel (%p1193_p0) target bundleno = 167 (0xa7), region = 28  ;;  %s544_s11 = sshll.u32 (!%p1193_p0), %s224_s10, 4 }
  0x4b   : > { %s225_s15 = scalar_lea.sflag (!%p1193_p0), [#allocation3], %s224_s10  ;;  %s228_s20 = scalar_lea.vmem (!%p1193_p0), [#allocation2], %s544_s11 }
  0x51   : > { %819 = dma.done.wait (%p1194_p5), %s225_s15, 256  }
  0x52   : > { %821 = vsyncadd (%p1194_p5), %s225_s15, 4294967040  ;;  %s234_s5 = scalar_lea.sflag [#allocation6], %s224_s10  ;;  %s237_s4 = scalar_lea.vmem [#allocation5], %s544_s11 }
  0x53   : > { %823 = dma.done.wait (%p1194_p5), %s234_s5, 256  }
  0x54   : > { %825 = vsyncadd (%p1194_p5), %s234_s5, 4294967040  ;;  %s1040_s23 = sand.u32 1, %s841_s13   ;;  %s548_s25 = sshll.u32 %s857_s17, 4  ;;  %v290_v0 = vlaneseq  ;;  %v871_v3 = vmov 0.0   ;;  %v1050_v9 = vld [vmem:[%s228_s20] sm:$0xff]  ;;  %v1052_v10 = vld [vmem:[%s228_s20 + $0x8] sm:$0xff] }
  0x55   : > { %s546_s6 = sshll.u32 %s1040_s23, 3  ;;  %v293_v1 = vstv %s548_s25  ;;  %v1054_v11 = vld [vmem:[%s237_s4] sm:$0xff]  ;;  %v1056_v12 = vld [vmem:[%s237_s4 + $0x8] sm:$0xff]  ;;  %v314_v16 = vand.u32 2147483647, %v1050_v9  ;;  %s553_s26 = sshll.u32 %s857_s17, 7 }
  0x56   : > { %v291_v2 = vshrl.u32 %v290_v0, 7  ;;  %s1044_s8 = scalar_lea.vmem [#allocation7], %s546_s6  ;;  %s1047_s21 = scalar_lea.vmem [#allocation8], %s546_s6  ;;  %v297_v6 = vand.u32 127, %v290_v0  ;;  %vm304_vm0 = vcmp.ne.f32.partialorder %v1054_v11, -1.0  ;;  %vm305_vm1 = vcmp.ne.f32.partialorder %v1056_v12, -1.0 }
  0x57   : > { %282 = vst [vmem:[%s1044_s8] sm:$0xff] %v871_v3  ;;  %283 = vst [vmem:[%s1047_s21] sm:$0xff] %v871_v3  ;;  %v315_v17 = vand.u32 2147483647, %v1052_v10  ;;  %v316_v19 = vsub.f32 0.0, %v314_v16  ;;  %s400_s24 = sshll.u32 %s1047_s21, 4  ;;  %s1084_s9 = scalar_lea.hbm %s1184_s3, %s553_s26  ;;  %s1077_s24 = int_to_ptr.vmem [resolvable:$true] %s400_s24 }
  0x58   : > { %v292_v4 = vadd.s32 8, %v291_v2  ;;  %v294_v5 = vadd.s32 %v293_v1, %v291_v2  ;;  %s374_s10 = scalar_lea.sflag [#allocation9], %s1040_s23  ;;  %s726_s11 = scalar_lea.vmem %s1077_s24, 128 }
  0x59   : > { %v317_v20 = vsub.f32 0.0, %v315_v17  ;;  %v318_v23 = vmul.f32 1.442695, %v316_v19  ;;  %p727_p2 = scmp.ne.s32.totalorder %s1077_s24, %s726_s11  ;;  %p1199_p8 = scmp.ne.s32.totalorder %s1189_s28, 0 }
  0x5a   : > { %v295_v7 = vadd.s32 %v293_v1, %v292_v4  ;;  %v298_v8 = vmul.u32 128, %v294_v5  ;;  %s872_s15 = smov [#allocation8]  }
  0x5b   : > { %v320_v24 = vmul.f32 1.442695, %v317_v20  ;;  %658 = vpow2.f32 %v318_v23  ;;  %p728_p9 = pnand %p727_p2, %p1199_p8  ;;  %s730_s20 = sshll.u32 %s872_s15, 4  ;;  %s731_s20 = int_to_ptr.vmem [resolvable:$false] %s730_s20 }
  0x5c   : > { %v299_v13 = vmul.u32 128, %v295_v7  ;;  %v300_v14 = vadd.s32 %v298_v8, %v297_v6  ;;  %s732_s5 = scalar_lea.vmem %s731_s20, 256  ;;  %p733_p11 = scmp.lt.s32.totalorder %s1077_s24, %s731_s20 }
  0x5d   : > { %660 = vpow2.f32 %v320_v24  ;;  %p729_p10 = pneg %p728_p9  ;;  %p734_p1 = scmp.lt.s32.totalorder %s732_s5, %s726_s11 }
  0x5e   : > { %v301_v15 = vadd.s32 %v299_v13, %v297_v6  ;;  %vm302_vm2 = vcmp.lt.s32.totalorder %v300_v14, 2048  ;;  %v365_v33 = vld [vmem:[%s1047_s21] sm:$0x1] }
  0x5f   : > { %vm1062_vm3 = vmand %vm302_vm2, %vm304_vm0  ;;  %p735_p3 = por %p734_p1, %p733_p11 }
  0x60   : > { %vm303_vm4 = vcmp.lt.s32.totalorder %v301_v15, 2048  ;;  %v549_v21 = vsel %vm1062_vm3, 1.0, %v871_v3 }
  0x61   : > { %vm1068_vm5 = vmand %vm303_vm4, %vm305_vm1  ;;  %p736_p7 = pnand %p735_p3, %p729_p10 }
  0x62   : > { %v550_v25 = vsel %vm1068_vm5, 1.0, %v871_v3 }
  0x63   : > { %v355_v26 = vadd.f32 %v550_v25, %v549_v21 }
  0x65   : > { %v356_v27 = vrot.slane %v355_v26, 4  ;;  %v659_v32 = vpop.eup %658 }
  0x66   : > { %v322_v35 = vadd.f32 1.0, %v659_v32  ;;  %v325_v39 = vmul.f32 -0.5, %v659_v32 }
  0x67   : > { %v357_v28 = vadd.f32 %v356_v27, %v355_v26  ;;  %v661_v34 = vpop.eup %660 }
  0x68   : > { %v331_v37 = vadd.f32 1.0, %v661_v34  ;;  %662 = vlog2.f32 %v322_v35  ;;  %v334_v40 = vmul.f32 -0.5, %v661_v34 }
  0x69   : > { %v358_v29 = vrot.slane %v357_v28, 2 }
  0x6a   : > { %664 = vlog2.f32 %v331_v37 }
  0x6b   : > { %v359_v30 = vadd.f32 %v358_v29, %v357_v28 }
  0x6d   : > { %v360_v31 = vrot.slane %v359_v30, 1 }
  0x6f   : > { %v361_v36 = vadd.f32 %v360_v31, %v359_v30 }
  0x71   : > { %v366_v38 = vadd.f32 %v365_v33, %v361_v36 }
  0x73   : > { %367 = vst [vmem:[%s1047_s21] sm:$0x1] %v366_v38 }
  0x74   : > { %739 = shalt.err (!%p736_p7)
}
  0x75   : > { %s740_s4 = scalar_lea.hbm %s1084_s9, 128  ;;  %s744_s21 = scalar_lea.hbm %s1184_s3, 256 }
  0x76   : > { %p741_p13 = scmp.ne.s32.totalorder %s1084_s9, %s740_s4  ;;  %p745_p12 = scmp.lt.u32.totalorder %s1084_s9, %s1184_s3 }
  0x77   : > { %p746_p0 = scmp.lt.u32.totalorder %s744_s21, %s740_s4  ;;  %p748_p2 = scmp.lt.u32.totalorder %s740_s4, %s1084_s9 }
  0x78   : > { %p742_p4 = pnand %p741_p13, %p1199_p8 }
  0x79   : > { %p747_p5 = por %p746_p0, %p745_p12 }
  0x7a   : > { %p743_p6 = pneg %p742_p4 }
  0x7b   : > { %p749_p9 = por %p748_p2, %p747_p5 }
  0x7d   : > { %p750_p10 = pnand %p749_p9, %p743_p6 }
  0x7f   : > { %753 = shalt.err (!%p750_p10)
}
  0x80   : > { %564 = dma.vmem_to_hbm [thread:$0]  (%p1199_p8), %s1077_s24, 128, %s1084_s9, %s374_s10   ;;  %v326_v41 = vadd.f32 1.0, %v325_v39  ;;  %v308_v42 = vmax.f32 %v1050_v9, 0.0  ;;  %v310_v43 = vmul.f32 %v1054_v11, %v1050_v9  ;;  %v328_v44 = vand.u32 2147483647, %v659_v32  ;;  %v663_v50 = vpop.eup %662 }
  0x81   : > { %v335_v45 = vadd.f32 1.0, %v334_v40  ;;  %v309_v46 = vmax.f32 %v1052_v10, 0.0  ;;  %v311_v47 = vmul.f32 %v1056_v12, %v1052_v10  ;;  %v337_v48 = vand.u32 2147483647, %v661_v34  ;;  %v665_v53 = vpop.eup %664  ;;  %s387_s24 = sshll.u32 %s1044_s8, 4  ;;  %s1128_s11 = scalar_lea.hbm %s1183_s2, %s553_s26  ;;  %s1121_s24 = int_to_ptr.vmem [resolvable:$true] %s387_s24 }
  0x82   : > { %v327_v49 = vmul.f32 %v659_v32, %v326_v41  ;;  %v312_v51 = vsub.f32 %v308_v42, %v310_v43  ;;  %vm329_vm6 = vcmp.lt.f32.partialorder %v328_v44, 0.0004427343  ;;  %v324_v55 = vmul.f32 0.6931472, %v663_v50  ;;  %v362_v5 = vld [vmem:[%s1044_s8] sm:$0x1] }
  0x83   : > { %v336_v52 = vmul.f32 %v661_v34, %v335_v45  ;;  %v313_v54 = vsub.f32 %v309_v46, %v311_v47  ;;  %vm338_vm7 = vcmp.lt.f32.partialorder %v337_v48, 0.0004427343  ;;  %v333_v56 = vmul.f32 0.6931472, %v665_v53  ;;  %s369_s15 = scalar_lea.sflag [#allocation4], %s1040_s23  ;;  %s754_s20 = scalar_lea.vmem %s1121_s24, 128 }
  0x84   : > { %v330_v57 = vsel %vm329_vm6, %v327_v49, %v324_v55  ;;  %p755_p11 = scmp.ne.s32.totalorder %s1121_s24, %s754_s20  ;;  %s873_s5 = smov [#allocation7]  }
  0x85   : > { %v339_v58 = vsel %vm338_vm7, %v336_v52, %v333_v56  ;;  %v340_v59 = vadd.f32 %v330_v57, %v312_v51  ;;  %s758_s4 = sshll.u32 %s873_s5, 4  ;;  %s759_s4 = int_to_ptr.vmem [resolvable:$false] %s758_s4 }
  0x86   : > { %v341_v60 = vadd.f32 %v339_v58, %v313_v54  ;;  %p756_p1 = pnand %p755_p11, %p1199_p8  ;;  %s760_s25 = scalar_lea.vmem %s759_s4, 256 }
  0x87   : > { %v342_v61 = vsel %vm1062_vm3, %v340_v59, 0.0  ;;  %p761_p7 = scmp.lt.s32.totalorder %s1121_s24, %s759_s4  ;;  %p762_p13 = scmp.lt.s32.totalorder %s760_s25, %s754_s20 }
  0x88   : > { %v343_v62 = vsel %vm1068_vm5, %v341_v60, 0.0  ;;  %p757_p3 = pneg %p756_p1 }
  0x89   : > { %v344_v63 = vadd.f32 %v343_v62, %v342_v61  ;;  %p763_p4 = por %p762_p13, %p761_p7 }
  0x8b   : > { %v345_v0 = vrot.slane %v344_v63, 4  ;;  %p764_p6 = pnand %p763_p4, %p757_p3 }
  0x8d   : > { %v346_v1 = vadd.f32 %v345_v0, %v344_v63 }
  0x8f   : > { %v347_v2 = vrot.slane %v346_v1, 2 }
  0x91   : > { %v348_v3 = vadd.f32 %v347_v2, %v346_v1 }
  0x93   : > { %v349_v4 = vrot.slane %v348_v3, 1 }
  0x95   : > { %v350_v6 = vadd.f32 %v349_v4, %v348_v3 }
  0x97   : > { %v363_v7 = vadd.f32 %v362_v5, %v350_v6 }
  0x99   : > { %364 = vst [vmem:[%s1044_s8] sm:$0x1] %v363_v7 }
  0x9a   : > { %767 = shalt.err (!%p764_p6)
}
  0x9b   : > { %s768_s17 = scalar_lea.hbm %s1128_s11, 128  ;;  %s772_s26 = scalar_lea.hbm %s1183_s2, 256 }
  0x9c   : > { %p769_p12 = scmp.ne.s32.totalorder %s1128_s11, %s768_s17  ;;  %p773_p2 = scmp.lt.u32.totalorder %s1128_s11, %s1183_s2 }
  0x9d   : > { %p774_p9 = scmp.lt.u32.totalorder %s772_s26, %s768_s17  ;;  %p776_p11 = scmp.lt.u32.totalorder %s768_s17, %s1128_s11 }
  0x9e   : > { %p770_p0 = pnand %p769_p12, %p1199_p8 }
  0x9f   : > { %p775_p10 = por %p774_p9, %p773_p2 }
  0xa0   : > { %p771_p5 = pneg %p770_p0 }
  0xa1   : > { %p777_p1 = por %p776_p11, %p775_p10 }
  0xa3   : > { %p778_p3 = pnand %p777_p1, %p771_p5 }
  0xa5   : > { %781 = shalt.err (!%p778_p3)
}
  0xa6   : > { %563 = dma.vmem_to_hbm [thread:$0]  (%p1199_p8), %s1121_s24, 128, %s1128_s11, %s369_s15  }
  0xa7 PF: > { %s412_s30 = sand.u32 1, %s837_s12   ;;  %p1200_p7 = scmp.ne.s32.totalorder %s1190_s29, 0 }
  0xa8   : > { %p1201_p13 = scmp.ge.s32.totalorder %s865_s19, 2  ;;  %s413_s7 = scalar_lea.sflag [#allocation4], %s412_s30 }
  0xaa   : > { %p575_p4 = pnand %p1201_p13, %p1200_p7 }
  0xac   : > { %827 = dma.done.wait (!%p575_p4), %s413_s7, 128  }
  0xad   : > { %829 = vsyncadd (!%p575_p4), %s413_s7, 4294967168  ;;  %s422_s9 = scalar_lea.sflag [#allocation9], %s412_s30 }
  0xae   : > { %831 = dma.done.wait (!%p575_p4), %s422_s9, 128  }
  0xaf   : > { %833 = vsyncadd (!%p575_p4), %s422_s9, 4294967168  ;;  %s26_s19 = sadd.s32 1, %s865_s19   ;;  %s1202_s12 = smov %s841_s13 }
  0xb0   : > { %p23_p6 = scmp.ge.s32.totalorder %s26_s19, 4   ;;  %s1203_s13 = smov %s845_s14 }
  0xb1   : > { %s1204_s14 = smov %s952_s27  ;;  %s1205_s15 = smov %s853_s16 }
  0xb2   : > { %s1171_s16 = smov 0   ;;  %s1206_s17 = smov %s861_s18 }
  0xb3   : > { %s1207_s18 = smov %s1209_s22  ;;  %25 = sbr.rel (!%p23_p6) target bundleno = 11 (0xb), region = 107 }
  0xba   :  { %427 = vsyncpa [#allocation3], 1 }
  0xbb   :  { %429 = vsyncpa [#allocation3 + $0x1], 1 }
  0xbc   :  { %430 = vsyncpa [#allocation6], 1 }
  0xbd   :  { %432 = vsyncpa [#allocation6 + $0x1], 1 }
  0xbe   :  { %433 = vsyncpa [#allocation4], 1 }
  0xbf   :  { %435 = vsyncpa [#allocation4 + $0x1], 1 }
  0xc0   :  { %436 = vsyncpa [#allocation9], 1 }
  0xc1   :  { %438 = vsyncpa [#allocation9 + $0x1], 1 }

</bundles_post_ra>
